<compile_context>
chip_gen: v6e
topology: v6e:2x2x1
jax: 0.10.0
libtpu: 0.0.40
codegen_flags: <defaults>
</compile_context>

<pallas_src>
import jax
import jax.numpy as jnp
from jax.experimental import pallas as pl
from jax.experimental.pallas import tpu as pltpu

_LANES = 128
_SUBLANES = 8
_MAX_BLOCK_ROWS = 1024   # 1024 x 128 f32 = 512 KiB per block; safe on v5e/v6e/v7x
_NUM_CORE_SPLITS = 2     # leading "parallel" axis -> both TensorCores on v7x


def _round_up(x, m):
    return ((x + m - 1) // m) * m


def _hybrid_loss_kernel(p_ref, t_ref, sq_ref, abs_ref):
    """Accumulates partial sums of (p-t)^2 and |p-t| for one input block.

    sq_ref / abs_ref are (8,128) lane-dense output accumulators that stay
    resident in VMEM across the reduction (second) grid axis.
    """
    @pl.when(pl.program_id(1) == 0)
    def _init():
        sq_ref[...] = jnp.zeros_like(sq_ref)
        abs_ref[...] = jnp.zeros_like(abs_ref)

    d = p_ref[...].astype(jnp.float32) - t_ref[...].astype(jnp.float32)
    # (block_rows, 128) -> (block_rows//8, 8, 128): the axis-0 sum is a chain
    # of vreg-aligned VPU adds; no per-step cross-lane/sublane (XLU) reduce.
    d3 = d.reshape(-1, _SUBLANES, _LANES)
    sq_ref[...] += jnp.sum(d3 * d3, axis=0)
    abs_ref[...] += jnp.sum(jnp.abs(d3), axis=0)


def _fused_loss_sums(pred, target):
    """One Pallas pass -> (sum((p-t)^2), sum(|p-t|)) as f32 scalars."""
    n_elem = pred.size
    rows = pl.cdiv(n_elem, _LANES)

    if rows <= _MAX_BLOCK_ROWS:
        num_splits = 1
        block_rows = _round_up(rows, _SUBLANES)
    else:
        num_splits = _NUM_CORE_SPLITS
        block_rows = min(_MAX_BLOCK_ROWS,
                         _round_up(pl.cdiv(rows, num_splits), _SUBLANES))

    padded_rows = _round_up(rows, block_rows * num_splits)
    blocks_per_split = padded_rows // (block_rows * num_splits)
    padded_elems = padded_rows * _LANES

    p = pred.reshape(-1)
    t = target.reshape(-1)
    if padded_elems != n_elem:
        # Zero padding contributes nothing to either sum; the means below
        # divide by the true n_elem.
        # TODO(synk): for large unaligned inputs the pad is a full HBM copy;
        # an in-kernel iota mask would avoid it at the cost of extra VPU work.
        p = jnp.pad(p, (0, padded_elems - n_elem))
        t = jnp.pad(t, (0, padded_elems - n_elem))
    p2 = p.reshape(padded_rows, _LANES)
    t2 = t.reshape(padded_rows, _LANES)

    in_spec = pl.BlockSpec((block_rows, _LANES),
                           lambda c, i: (c * blocks_per_split + i, 0))
    out_spec = pl.BlockSpec((None, _SUBLANES, _LANES), lambda c, i: (c, 0, 0))

    sq_part, abs_part = pl.pallas_call(
        _hybrid_loss_kernel,
        out_shape=(
            jax.ShapeDtypeStruct((num_splits, _SUBLANES, _LANES), jnp.float32),
            jax.ShapeDtypeStruct((num_splits, _SUBLANES, _LANES), jnp.float32),
        ),
        grid_spec=pltpu.PrefetchScalarGridSpec(
            num_scalar_prefetch=0,
            grid=(num_splits, blocks_per_split),
            in_specs=[in_spec, in_spec],
            out_specs=[out_spec, out_spec],
        ),
        compiler_params=pltpu.CompilerParams(
            dimension_semantics=("parallel", "arbitrary"),
            vmem_limit_bytes=32 * 1024 * 1024,
        ),
    )(p2, t2)

    # Single cross-lane/sublane reduction over the (num_splits, 8, 128)
    # partials, done once outside the kernel (tiny XLA reduce inside the jit).
    return jnp.sum(sq_part), jnp.sum(abs_part)


# ----- component loss callables (share ONE fused kernel pass) ---------------

def _mse_loss(pred, target, fused_sums=None, **kwargs):
    if fused_sums is None:
        fused_sums = _fused_loss_sums(pred, target)
    sum_sq, _ = fused_sums
    return sum_sq / jnp.float32(pred.size)


def _l1_loss(pred, target, fused_sums=None, **kwargs):
    if fused_sums is None:
        fused_sums = _fused_loss_sums(pred, target)
    _, sum_abs = fused_sums
    return sum_abs / jnp.float32(pred.size)


class HybridLoss:
    """JAX/Pallas port of the PyTorch HybridLoss module (same composition)."""

    def __init__(self, loss_desc_ls):
        self.loss_ls = [HybridLoss._get_loss_callable(d) for d in loss_desc_ls]

    @staticmethod
    def _get_loss_callable(loss_desc):
        def func(*args, **kwargs):
            if 'kwargs_list' in loss_desc:
                kw_filtered = {k: kwargs[k] for k in loss_desc['kwargs_list']}
            else:
                kw_filtered = kwargs
            return loss_desc['func'](*args, **kw_filtered)
        return func

    def __call__(self, *args, **kwargs):
        s = 0
        for loss in self.loss_ls:
            s = s + loss(*args, **kwargs)
        return s


if __name__ == "__main__":
    key = jax.random.PRNGKey(0)
    k_pred, k_tgt = jax.random.split(key)

    # NCHW, small shapes: batch=2, channels=4, spatial=16x16
    pred = jax.random.normal(k_pred, (2, 4, 16, 16), dtype=jnp.float32)
    target = jax.random.normal(k_tgt, (2, 4, 16, 16), dtype=jnp.float32)

    loss_desc_ls = [
        {'func': _mse_loss},                                # kwargs pass-through
        {'func': _l1_loss, 'kwargs_list': ['fused_sums']},  # filtered kwargs
    ]
    hybrid = HybridLoss(loss_desc_ls)

    @jax.jit
    def forward(p, t):
        # Single fused Pallas reduction shared by every component loss; the
        # per-loss means and the final sum are cheap scalar glue inside jit.
        sums = _fused_loss_sums(p, t)
        return hybrid(p, t, fused_sums=sums)

    total = forward(pred, target)
    total = jax.block_until_ready(total)

    # pure-JAX reference
    d = pred - target
    ref = jnp.mean(d * d) + jnp.mean(jnp.abs(d))
    assert jnp.allclose(total, ref, rtol=1e-5, atol=1e-5), (total, ref)

    print("KERNEL_OK")
</pallas_src>

<mosaic_0001>
module attributes {stable_mosaic.version = 11 : i64} {
  func.func @_hybrid_loss_kernel(%arg0: i32, %arg1: i32, %arg2: memref<16x128xf32, #tpu.memory_space<vmem>>, %arg3: memref<16x128xf32, #tpu.memory_space<vmem>>, %arg4: memref<1x8x128xf32, #tpu.memory_space<vmem>>, %arg5: memref<1x8x128xf32, #tpu.memory_space<vmem>>) attributes {dimension_semantics = [#tpu.dimension_semantics<parallel>, #tpu.dimension_semantics<arbitrary>], iteration_bounds = array<i64: 1, 1>, scalar_prefetch = 0 : i64, scratch_operands = 0 : i64, tpu.core_type = #tpu.core_type<tc>, window_params = [{transform_indices = @transform_0, window_bounds = array<i64: 16, 128>}, {transform_indices = @transform_1, window_bounds = array<i64: 16, 128>}, {transform_indices = @transform_2, window_bounds = array<i64: 1, 8, 128>}, {transform_indices = @transform_3, window_bounds = array<i64: 1, 8, 128>}]} {
    %c0_i32 = arith.constant 0 : i32
    %0 = arith.cmpi eq, %arg1, %c0_i32 : i32
    %1 = arith.extui %0 : i1 to i32
    %c0_i32_0 = arith.constant 0 : i32
    %2 = arith.cmpi ne, %1, %c0_i32_0 : i32
    scf.if %2 {
      %cst_17 = arith.constant 0.000000e+00 : f32
      %23 = vector.broadcast %cst_17 : f32 to vector<8x128xf32>
      %c0_18 = arith.constant 0 : index
      %c0_19 = arith.constant 0 : index
      %c0_20 = arith.constant 0 : index
      %24 = vector.load %arg4[%c0_18, %c0_19, %c0_20] : memref<1x8x128xf32, #tpu.memory_space<vmem>>, vector<1x8x128xf32>
      %25 = vector.shape_cast %24 : vector<1x8x128xf32> to vector<8x128xf32>
      %26 = vector.shape_cast %23 : vector<8x128xf32> to vector<1x8x128xf32>
      tpu.vector_store %arg4[%c0_18, %c0_19, %c0_20], %26 {strides = array<i32>} : memref<1x8x128xf32, #tpu.memory_space<vmem>>, vector<1x8x128xf32>,
      %cst_21 = arith.constant 0.000000e+00 : f32
      %27 = vector.broadcast %cst_21 : f32 to vector<8x128xf32>
      %c0_22 = arith.constant 0 : index
      %c0_23 = arith.constant 0 : index
      %c0_24 = arith.constant 0 : index
      %28 = vector.load %arg5[%c0_22, %c0_23, %c0_24] : memref<1x8x128xf32, #tpu.memory_space<vmem>>, vector<1x8x128xf32>
      %29 = vector.shape_cast %28 : vector<1x8x128xf32> to vector<8x128xf32>
      %30 = vector.shape_cast %27 : vector<8x128xf32> to vector<1x8x128xf32>
      tpu.vector_store %arg5[%c0_22, %c0_23, %c0_24], %30 {strides = array<i32>} : memref<1x8x128xf32, #tpu.memory_space<vmem>>, vector<1x8x128xf32>,
    } else {
    }
    %c0 = arith.constant 0 : index
    %c0_1 = arith.constant 0 : index
    %3 = vector.load %arg2[%c0, %c0_1] : memref<16x128xf32, #tpu.memory_space<vmem>>, vector<16x128xf32>
    %c0_2 = arith.constant 0 : index
    %c0_3 = arith.constant 0 : index
    %4 = vector.load %arg3[%c0_2, %c0_3] : memref<16x128xf32, #tpu.memory_space<vmem>>, vector<16x128xf32>
    %5 = arith.subf %3, %4 : vector<16x128xf32>
    %6 = vector.shape_cast %5 : vector<16x128xf32> to vector<2x8x128xf32>
    %c0_4 = arith.constant 0 : index
    %c0_5 = arith.constant 0 : index
    %c0_6 = arith.constant 0 : index
    %7 = vector.load %arg4[%c0_4, %c0_5, %c0_6] : memref<1x8x128xf32, #tpu.memory_space<vmem>>, vector<1x8x128xf32>
    %8 = vector.shape_cast %7 : vector<1x8x128xf32> to vector<8x128xf32>
    %9 = arith.mulf %6, %6 : vector<2x8x128xf32>
    %cst = arith.constant dense<0.000000e+00> : vector<8x128xf32>
    %10 = vector.multi_reduction <add>, %9, %cst [0] : vector<2x8x128xf32> to vector<8x128xf32>
    %11 = arith.addf %8, %10 : vector<8x128xf32>
    %c0_7 = arith.constant 0 : index
    %c0_8 = arith.constant 0 : index
    %c0_9 = arith.constant 0 : index
    %12 = vector.load %arg4[%c0_7, %c0_8, %c0_9] : memref<1x8x128xf32, #tpu.memory_space<vmem>>, vector<1x8x128xf32>
    %13 = vector.shape_cast %12 : vector<1x8x128xf32> to vector<8x128xf32>
    %14 = vector.shape_cast %11 : vector<8x128xf32> to vector<1x8x128xf32>
    tpu.vector_store %arg4[%c0_7, %c0_8, %c0_9], %14 {strides = array<i32>} : memref<1x8x128xf32, #tpu.memory_space<vmem>>, vector<1x8x128xf32>,
    %c0_10 = arith.constant 0 : index
    %c0_11 = arith.constant 0 : index
    %c0_12 = arith.constant 0 : index
    %15 = vector.load %arg5[%c0_10, %c0_11, %c0_12] : memref<1x8x128xf32, #tpu.memory_space<vmem>>, vector<1x8x128xf32>
    %16 = vector.shape_cast %15 : vector<1x8x128xf32> to vector<8x128xf32>
    %17 = math.absf %6 : vector<2x8x128xf32>
    %cst_13 = arith.constant dense<0.000000e+00> : vector<8x128xf32>
    %18 = vector.multi_reduction <add>, %17, %cst_13 [0] : vector<2x8x128xf32> to vector<8x128xf32>
    %19 = arith.addf %16, %18 : vector<8x128xf32>
    %c0_14 = arith.constant 0 : index
    %c0_15 = arith.constant 0 : index
    %c0_16 = arith.constant 0 : index
    %20 = vector.load %arg5[%c0_14, %c0_15, %c0_16] : memref<1x8x128xf32, #tpu.memory_space<vmem>>, vector<1x8x128xf32>
    %21 = vector.shape_cast %20 : vector<1x8x128xf32> to vector<8x128xf32>
    %22 = vector.shape_cast %19 : vector<8x128xf32> to vector<1x8x128xf32>
    tpu.vector_store %arg5[%c0_14, %c0_15, %c0_16], %22 {strides = array<i32>} : memref<1x8x128xf32, #tpu.memory_space<vmem>>, vector<1x8x128xf32>,
    return
  }
  func.func @transform_0(%arg0: i32, %arg1: i32) -> (i32, i32) {
    %c1_i32 = arith.constant 1 : i32
    %0 = arith.muli %arg0, %c1_i32 : i32
    %1 = arith.addi %0, %arg1 : i32
    %c0_i32 = arith.constant 0 : i32
    %c0_i32_0 = arith.constant 0 : i32
    return %1, %c0_i32 : i32, i32
  }
  func.func @transform_1(%arg0: i32, %arg1: i32) -> (i32, i32) {
    %c1_i32 = arith.constant 1 : i32
    %0 = arith.muli %arg0, %c1_i32 : i32
    %1 = arith.addi %0, %arg1 : i32
    %c0_i32 = arith.constant 0 : i32
    %c0_i32_0 = arith.constant 0 : i32
    return %1, %c0_i32 : i32, i32
  }
  func.func @transform_2(%arg0: i32, %arg1: i32) -> (i32, i32, i32) {
    %c0_i32 = arith.constant 0 : i32
    %c0_i32_0 = arith.constant 0 : i32
    %c0_i32_1 = arith.constant 0 : i32
    return %arg0, %c0_i32, %c0_i32_0 : i32, i32, i32
  }
  func.func @transform_3(%arg0: i32, %arg1: i32) -> (i32, i32, i32) {
    %c0_i32 = arith.constant 0 : i32
    %c0_i32_0 = arith.constant 0 : i32
    %c0_i32_1 = arith.constant 0 : i32
    return %arg0, %c0_i32, %c0_i32_0 : i32, i32, i32
  }
}

</mosaic_0001>

<bundles_post_ra>
// kernel: forward.1
= control target key start
LH: loop header
LB: loop body
LE: loop exit
PB: predicated region body
PF: predicated region fallthrough
CT: control target
= control target key end

     0   :  { %s140_s0 = inlined_call_operand.vmem [shape: f32[16,128], index: 0, kind: input, shape index: {}]   ;;  %s141_s1 = inlined_call_operand.vmem [shape: f32[16,128], index: 1, kind: input, shape index: {}]   ;;  %s142_s2 = inlined_call_operand.vmem [shape: f32[1,8,128], index: 2, kind: output, shape index: {0}]   ;;  %s143_s3 = inlined_call_operand.vmem [shape: f32[1,8,128], index: 3, kind: output, shape index: {1}]  }
   0x1   :  { %v63_v0 = vld [vmem:[%s140_s0] sm:$0xff]  ;;  %v64_v1 = vld [vmem:[%s140_s0 + $0x8] sm:$0xff] }
   0x2   :  { %v65_v2 = vld [vmem:[%s141_s1] sm:$0xff]  ;;  %v66_v3 = vld [vmem:[%s141_s1 + $0x8] sm:$0xff] }
   0x3   :  { %v67_v4 = vsub.f32 %v63_v0, %v65_v2  ;;  %v68_v5 = vsub.f32 %v64_v1, %v66_v3 }
   0x5   :  { %v70_v6 = vmul.f32 %v67_v4, %v67_v4  ;;  %v76_v7 = vand.u32 2147483647, %v67_v4  ;;  %v71_v8 = vmul.f32 %v68_v5, %v68_v5  ;;  %v77_v9 = vand.u32 2147483647, %v68_v5 }
   0x7   :  { %v72_v10 = vadd.f32 %v71_v8, %v70_v6  ;;  %v78_v11 = vadd.f32 %v77_v9, %v76_v7 }
   0x9   :  { %74 = vst [vmem:[%s142_s2] sm:$0xff] %v72_v10  ;;  %80 = vst [vmem:[%s143_s3] sm:$0xff] %v78_v11 }

</bundles_post_ra>
